<compile_context>
chip_gen: v7x
topology: tpu7x:2x2x1
jax: 0.10.0
libtpu: 0.0.40
codegen_flags: <defaults>
</compile_context>

<pallas_src>
import functools

import jax
import jax.numpy as jnp
import numpy as np
from jax.experimental import pallas as pl
from jax.experimental.pallas import tpu as pltpu

_BN_EPS = 1e-5  # PyTorch BatchNorm2d default


# ----------------------------- Pallas kernel -------------------------------
def _gemm_bias_prelu_kernel(x_ref, w_ref, b_ref, alpha_ref, o_ref):
    # x_ref:     (1, K, TM)  im2col columns for this (batch, col-tile); M in lanes
    # w_ref:     (C, K)      dense weight slab (BN folded, skip stacked)
    # b_ref:     (C, 1)
    # alpha_ref: (1,) SMEM   PReLU slope (0.0 => plain ReLU)
    # o_ref:     (1, C, TM)  NCHW-flattened output tile (lane-dense stores)
    acc = jnp.dot(w_ref[...], x_ref[0], preferred_element_type=jnp.float32)
    acc = acc + b_ref[...]                          # (C, 1) broadcasts over lanes
    alpha = alpha_ref[0]
    y = jnp.where(acc > 0, acc, alpha * acc)        # PReLU / ReLU epilogue
    o_ref[...] = y.reshape(o_ref.shape).astype(o_ref.dtype)


def _pick_col_tile(m, k, c, vmem_budget=8 << 20):
    """Largest lane tile dividing m that is a multiple of 128 and fits budget."""
    bytes_per_col = 4 * (2 * k + 2 * c)          # double-buffered lhs + out cols
    tmax = max(128, (vmem_budget // max(bytes_per_col, 1)) // 128 * 128)
    if m <= tmax:
        return m
    t = min(tmax, m - m % 128)
    while t >= 128:
        if m % t == 0:
            return t
        t -= 128
    return m


def _conv_as_gemm(lhs, rhs, bias, alpha):
    """out[n] = prelu(rhs @ lhs[n] + bias, alpha); single-matmul Pallas kernel."""
    n, k, m = lhs.shape
    c = rhs.shape[0]
    tm = _pick_col_tile(m, k, c)
    grid = (n, m // tm)
    return pl.pallas_call(
        _gemm_bias_prelu_kernel,
        out_shape=jax.ShapeDtypeStruct((n, c, m), jnp.float32),
        grid_spec=pltpu.PrefetchScalarGridSpec(
            num_scalar_prefetch=0,
            grid=grid,
            in_specs=[
                pl.BlockSpec((1, k, tm), lambda ni, mi: (ni, 0, mi)),
                pl.BlockSpec((c, k), lambda ni, mi: (0, 0)),
                pl.BlockSpec((c, 1), lambda ni, mi: (0, 0)),
                pl.BlockSpec(memory_space=pltpu.MemorySpace.SMEM),
            ],
            out_specs=pl.BlockSpec((1, c, tm), lambda ni, mi: (ni, 0, mi)),
        ),
        compiler_params=pltpu.CompilerParams(
            dimension_semantics=("parallel", "parallel")),
    )(lhs, rhs, bias.reshape(c, 1), jnp.asarray(alpha, jnp.float32).reshape(1))


# ----------------------------- wrapper glue ---------------------------------
def _fold_bn(w_oihw, b, gamma, beta, mean, var):
    """Fold inference-mode BatchNorm into conv weights/bias."""
    scale = gamma * jax.lax.rsqrt(var + _BN_EPS)
    w_f = w_oihw * scale[:, None, None, None]
    b_f = (b - mean) * scale + beta
    return w_f, b_f


def _im2col_3x3_nchw(x_pad, stride, out_h, out_w):
    """(N, C, H+2, W+2) padded NCHW -> (N, 9*C, out_h*out_w) patch matrix."""
    n, c = x_pad.shape[0], x_pad.shape[1]
    cols = []
    for kh in range(3):
        for kw in range(3):
            cols.append(x_pad[:, :, kh:kh + (out_h - 1) * stride + 1:stride,
                                    kw:kw + (out_w - 1) * stride + 1:stride])
    patches = jnp.concatenate(cols, axis=1)          # (N, 9*C, out_h, out_w)
    return patches.reshape(n, 9 * c, out_h * out_w)


@functools.partial(jax.jit, static_argnames=("strides", "use_1x1_conv"))
def residual_block(x_nchw, params, *, strides=1, use_1x1_conv=True):
    """Forward pass of Residual_Block. Input/output NCHW (PyTorch layout)."""
    n, ci, h, w = x_nchw.shape
    co = params["w1"].shape[0]
    s = strides
    h1 = (h + 2 - 3) // s + 1
    w1 = (w + 2 - 3) // s + 1
    m = h1 * w1

    # --- conv1 (+BN1 folded) + PReLU : one K = 9*Ci GEMM ---------------------
    w1f, b1f = _fold_bn(params["w1"], params["b1"], params["gamma1"],
                        params["beta1"], params["mean1"], params["var1"])
    rhs1 = jnp.transpose(w1f, (0, 2, 3, 1)).reshape(co, 9 * ci)       # (Co, 9Ci)
    x_pad = jnp.pad(x_nchw, ((0, 0), (0, 0), (1, 1), (1, 1)))
    lhs1 = _im2col_3x3_nchw(x_pad, s, h1, w1)                         # (N, 9Ci, M)
    a1 = _conv_as_gemm(lhs1, rhs1, b1f, params["alpha"])              # (N, Co, M)

    # --- conv2 (+BN2 folded) + skip(1x1 conv / identity) + add + ReLU --------
    # fused into ONE GEMM by stacking the skip weights next to the conv2 slab.
    w2f, b2f = _fold_bn(params["w2"], params["b2"], params["gamma2"],
                        params["beta2"], params["mean2"], params["var2"])
    rhs2 = jnp.transpose(w2f, (0, 2, 3, 1)).reshape(co, 9 * co)       # (Co, 9Co)

    a1_pad = jnp.pad(a1.reshape(n, co, h1, w1), ((0, 0), (0, 0), (1, 1), (1, 1)))
    lhs2 = _im2col_3x3_nchw(a1_pad, 1, h1, w1)                        # (N, 9Co, M)

    skip_lhs = x_nchw[:, :, 0:(h1 - 1) * s + 1:s,
                            0:(w1 - 1) * s + 1:s].reshape(n, ci, m)   # (N, Ci, M)
    if use_1x1_conv:
        skip_w = params["w1x1"][:, :, 0, 0]                           # (Co, Ci)
        skip_b = params["b1x1"]
    else:
        # identity skip (valid only when Ci == Co and stride == 1, as in PyTorch)
        skip_w = jnp.eye(co, ci, dtype=jnp.float32)
        skip_b = jnp.zeros((co,), jnp.float32)

    lhs2 = jnp.concatenate([lhs2, skip_lhs], axis=1)                  # (N, 9Co+Ci, M)
    rhs2 = jnp.concatenate([rhs2, skip_w], axis=1)                    # (Co, 9Co+Ci)
    y = _conv_as_gemm(lhs2, rhs2, b2f + skip_b, jnp.float32(0.0))     # ReLU

    return y.reshape(n, co, h1, w1)                                   # NCHW out


# ----------------------------- reference ------------------------------------
def _reference(x, p, strides=1, use_1x1_conv=True):
    """Pure-JAX (lax.conv) reference for validation; eval-mode BatchNorm."""
    def conv(x, w, b, stride, pad):
        y = jax.lax.conv_general_dilated(
            x, w, (stride, stride), ((pad, pad), (pad, pad)),
            dimension_numbers=("NCHW", "OIHW", "NCHW"))
        return y + b.reshape(1, -1, 1, 1)

    def bn(x, gamma, beta, mean, var):
        inv = jax.lax.rsqrt(var + _BN_EPS)
        return ((x - mean.reshape(1, -1, 1, 1)) * (gamma * inv).reshape(1, -1, 1, 1)
                + beta.reshape(1, -1, 1, 1))

    y = conv(x, p["w1"], p["b1"], strides, 1)
    y = bn(y, p["gamma1"], p["beta1"], p["mean1"], p["var1"])
    y = jnp.where(y > 0, y, p["alpha"] * y)
    y = conv(y, p["w2"], p["b2"], 1, 1)
    y = bn(y, p["gamma2"], p["beta2"], p["mean2"], p["var2"])
    skip = conv(x, p["w1x1"], p["b1x1"], strides, 0) if use_1x1_conv else x
    return jnp.maximum(y + skip, 0.0)


if __name__ == "__main__":
    key = jax.random.PRNGKey(0)
    ks = jax.random.split(key, 16)

    N, Ci, Co, H, W = 2, 4, 8, 16, 16
    STRIDES, USE_1X1 = 1, True

    x = jax.random.normal(ks[0], (N, Ci, H, W), jnp.float32)

    params = dict(
        w1=jax.random.normal(ks[1], (Co, Ci, 3, 3), jnp.float32) / np.sqrt(Ci * 9),
        b1=0.01 * jax.random.normal(ks[2], (Co,), jnp.float32),
        gamma1=1.0 + 0.1 * jax.random.normal(ks[3], (Co,), jnp.float32),
        beta1=0.1 * jax.random.normal(ks[4], (Co,), jnp.float32),
        mean1=0.05 * jax.random.normal(ks[5], (Co,), jnp.float32),
        var1=1.0 + 0.1 * jax.random.uniform(ks[6], (Co,), jnp.float32),
        alpha=jnp.float32(0.25),  # PReLU default init (num_parameters=1)
        w2=jax.random.normal(ks[7], (Co, Co, 3, 3), jnp.float32) / np.sqrt(Co * 9),
        b2=0.01 * jax.random.normal(ks[8], (Co,), jnp.float32),
        gamma2=1.0 + 0.1 * jax.random.normal(ks[9], (Co,), jnp.float32),
        beta2=0.1 * jax.random.normal(ks[10], (Co,), jnp.float32),
        mean2=0.05 * jax.random.normal(ks[11], (Co,), jnp.float32),
        var2=1.0 + 0.1 * jax.random.uniform(ks[12], (Co,), jnp.float32),
        w1x1=jax.random.normal(ks[13], (Co, Ci, 1, 1), jnp.float32) / np.sqrt(Ci),
        b1x1=0.01 * jax.random.normal(ks[14], (Co,), jnp.float32),
    )

    out = residual_block(x, params, strides=STRIDES, use_1x1_conv=USE_1X1)
    out = jax.block_until_ready(out)

    ref = jax.block_until_ready(_reference(x, params, STRIDES, USE_1X1))
    assert out.shape == ref.shape == (N, Co, H, W), (out.shape, ref.shape)
    np.testing.assert_allclose(np.asarray(out), np.asarray(ref), rtol=2e-3, atol=2e-3)

    print("KERNEL_OK")
</pallas_src>

<mosaic_0001>
module attributes {stable_mosaic.version = 11 : i64} {
  func.func @_gemm_bias_prelu_kernel(%arg0: i32, %arg1: i32, %arg2: memref<1x36x256xf32, #tpu.memory_space<vmem>>, %arg3: memref<8x36xf32, #tpu.memory_space<vmem>>, %arg4: memref<8x1xf32, #tpu.memory_space<vmem>>, %arg5: memref<1xf32, #tpu.memory_space<smem>>, %arg6: memref<1x8x256xf32, #tpu.memory_space<vmem>>) attributes {dimension_semantics = [#tpu.dimension_semantics<parallel>, #tpu.dimension_semantics<parallel>], iteration_bounds = array<i64: 2, 1>, scalar_prefetch = 0 : i64, scratch_operands = 0 : i64, tpu.core_type = #tpu.core_type<tc>, window_params = [{transform_indices = @transform_0, window_bounds = array<i64: 1, 36, 256>}, {pipeline_mode = #tpu.pipeline_mode<synchronous>, transform_indices = @transform_1, window_bounds = array<i64: 8, 36>}, {pipeline_mode = #tpu.pipeline_mode<synchronous>, transform_indices = @transform_2, window_bounds = array<i64: 8, 1>}, {transform_indices = @transform_3, window_bounds = array<i64: 1>}, {transform_indices = @transform_4, window_bounds = array<i64: 1, 8, 256>}]} {
    %c0 = arith.constant 0 : index
    %c0_0 = arith.constant 0 : index
    %0 = vector.load %arg3[%c0, %c0_0] : memref<8x36xf32, #tpu.memory_space<vmem>>, vector<8x36xf32>
    %c0_1 = arith.constant 0 : index
    %c0_2 = arith.constant 0 : index
    %c0_3 = arith.constant 0 : index
    %1 = vector.load %arg2[%c0_1, %c0_2, %c0_3] : memref<1x36x256xf32, #tpu.memory_space<vmem>>, vector<1x36x256xf32>
    %2 = vector.shape_cast %1 : vector<1x36x256xf32> to vector<36x256xf32>
    %cst = arith.constant dense<0.000000e+00> : vector<8x256xf32>
    %3 = tpu.matmul %0, %2, %cst {dimension_numbers = #tpu.dot_dimension_numbers<[1], [0], [0], [1], [0, 0, 1, 1], [], []>} : vector<8x36xf32>, vector<36x256xf32>, vector<8x256xf32> -> vector<8x256xf32>
    %c0_4 = arith.constant 0 : index
    %c0_5 = arith.constant 0 : index
    %4 = vector.load %arg4[%c0_4, %c0_5] : memref<8x1xf32, #tpu.memory_space<vmem>>, vector<8x1xf32>
    %5 = vector.broadcast %4 : vector<8x1xf32> to vector<8x256xf32>
    %6 = arith.addf %3, %5 : vector<8x256xf32>
    %c0_6 = arith.constant 0 : index
    %7 = memref.load %arg5[%c0_6] : memref<1xf32, #tpu.memory_space<smem>>
    %cst_7 = arith.constant 0.000000e+00 : f32
    %8 = vector.broadcast %cst_7 : f32 to vector<8x256xf32>
    %9 = arith.cmpf ogt, %6, %8 : vector<8x256xf32>
    %10 = vector.broadcast %7 : f32 to vector<8x256xf32>
    %11 = arith.mulf %10, %6 : vector<8x256xf32>
    %12 = arith.select %9, %6, %11 : vector<8x256xi1>, vector<8x256xf32>
    %13 = vector.shape_cast %12 : vector<8x256xf32> to vector<1x8x256xf32>
    %c0_8 = arith.constant 0 : index
    %c0_9 = arith.constant 0 : index
    %c0_10 = arith.constant 0 : index
    %14 = vector.load %arg6[%c0_8, %c0_9, %c0_10] : memref<1x8x256xf32, #tpu.memory_space<vmem>>, vector<1x8x256xf32>
    tpu.vector_store %arg6[%c0_8, %c0_9, %c0_10], %13 {strides = array<i32>} : memref<1x8x256xf32, #tpu.memory_space<vmem>>, vector<1x8x256xf32>,
    return
  }
  func.func @transform_0(%arg0: i32, %arg1: i32) -> (i32, i32, i32) {
    %c0_i32 = arith.constant 0 : i32
    %c0_i32_0 = arith.constant 0 : i32
    return %arg0, %c0_i32, %arg1 : i32, i32, i32
  }
  func.func @transform_1(%arg0: i32, %arg1: i32) -> (i32, i32) {
    %c0_i32 = arith.constant 0 : i32
    %c0_i32_0 = arith.constant 0 : i32
    %c0_i32_1 = arith.constant 0 : i32
    return %c0_i32, %c0_i32_0 : i32, i32
  }
  func.func @transform_2(%arg0: i32, %arg1: i32) -> (i32, i32) {
    %c0_i32 = arith.constant 0 : i32
    %c0_i32_0 = arith.constant 0 : i32
    %c0_i32_1 = arith.constant 0 : i32
    return %c0_i32, %c0_i32_0 : i32, i32
  }
  func.func @transform_3(%arg0: i32, %arg1: i32) -> i32 {
    %c0_i32 = arith.constant 0 : i32
    %c0_i32_0 = arith.constant 0 : i32
    return %c0_i32 : i32
  }
  func.func @transform_4(%arg0: i32, %arg1: i32) -> (i32, i32, i32) {
    %c0_i32 = arith.constant 0 : i32
    %c0_i32_0 = arith.constant 0 : i32
    return %arg0, %c0_i32, %arg1 : i32, i32, i32
  }
}

module attributes {stable_mosaic.version = 11 : i64} {
  func.func @_gemm_bias_prelu_kernel(%arg0: i32, %arg1: i32, %arg2: memref<1x76x256xf32, #tpu.memory_space<vmem>>, %arg3: memref<8x76xf32, #tpu.memory_space<vmem>>, %arg4: memref<8x1xf32, #tpu.memory_space<vmem>>, %arg5: memref<1xf32, #tpu.memory_space<smem>>, %arg6: memref<1x8x256xf32, #tpu.memory_space<vmem>>) attributes {dimension_semantics = [#tpu.dimension_semantics<parallel>, #tpu.dimension_semantics<parallel>], iteration_bounds = array<i64: 2, 1>, scalar_prefetch = 0 : i64, scratch_operands = 0 : i64, tpu.core_type = #tpu.core_type<tc>, window_params = [{transform_indices = @transform_0, window_bounds = array<i64: 1, 76, 256>}, {pipeline_mode = #tpu.pipeline_mode<synchronous>, transform_indices = @transform_1, window_bounds = array<i64: 8, 76>}, {pipeline_mode = #tpu.pipeline_mode<synchronous>, transform_indices = @transform_2, window_bounds = array<i64: 8, 1>}, {transform_indices = @transform_3, window_bounds = array<i64: 1>}, {transform_indices = @transform_4, window_bounds = array<i64: 1, 8, 256>}]} {
    %c0 = arith.constant 0 : index
    %c0_0 = arith.constant 0 : index
    %0 = vector.load %arg3[%c0, %c0_0] : memref<8x76xf32, #tpu.memory_space<vmem>>, vector<8x76xf32>
    %c0_1 = arith.constant 0 : index
    %c0_2 = arith.constant 0 : index
    %c0_3 = arith.constant 0 : index
    %1 = vector.load %arg2[%c0_1, %c0_2, %c0_3] : memref<1x76x256xf32, #tpu.memory_space<vmem>>, vector<1x76x256xf32>
    %2 = vector.shape_cast %1 : vector<1x76x256xf32> to vector<76x256xf32>
    %cst = arith.constant dense<0.000000e+00> : vector<8x256xf32>
    %3 = tpu.matmul %0, %2, %cst {dimension_numbers = #tpu.dot_dimension_numbers<[1], [0], [0], [1], [0, 0, 1, 1], [], []>} : vector<8x76xf32>, vector<76x256xf32>, vector<8x256xf32> -> vector<8x256xf32>
    %c0_4 = arith.constant 0 : index
    %c0_5 = arith.constant 0 : index
    %4 = vector.load %arg4[%c0_4, %c0_5] : memref<8x1xf32, #tpu.memory_space<vmem>>, vector<8x1xf32>
    %5 = vector.broadcast %4 : vector<8x1xf32> to vector<8x256xf32>
    %6 = arith.addf %3, %5 : vector<8x256xf32>
    %c0_6 = arith.constant 0 : index
    %7 = memref.load %arg5[%c0_6] : memref<1xf32, #tpu.memory_space<smem>>
    %cst_7 = arith.constant 0.000000e+00 : f32
    %8 = vector.broadcast %cst_7 : f32 to vector<8x256xf32>
    %9 = arith.cmpf ogt, %6, %8 : vector<8x256xf32>
    %10 = vector.broadcast %7 : f32 to vector<8x256xf32>
    %11 = arith.mulf %10, %6 : vector<8x256xf32>
    %12 = arith.select %9, %6, %11 : vector<8x256xi1>, vector<8x256xf32>
    %13 = vector.shape_cast %12 : vector<8x256xf32> to vector<1x8x256xf32>
    %c0_8 = arith.constant 0 : index
    %c0_9 = arith.constant 0 : index
    %c0_10 = arith.constant 0 : index
    %14 = vector.load %arg6[%c0_8, %c0_9, %c0_10] : memref<1x8x256xf32, #tpu.memory_space<vmem>>, vector<1x8x256xf32>
    tpu.vector_store %arg6[%c0_8, %c0_9, %c0_10], %13 {strides = array<i32>} : memref<1x8x256xf32, #tpu.memory_space<vmem>>, vector<1x8x256xf32>,
    return
  }
  func.func @transform_0(%arg0: i32, %arg1: i32) -> (i32, i32, i32) {
    %c0_i32 = arith.constant 0 : i32
    %c0_i32_0 = arith.constant 0 : i32
    return %arg0, %c0_i32, %arg1 : i32, i32, i32
  }
  func.func @transform_1(%arg0: i32, %arg1: i32) -> (i32, i32) {
    %c0_i32 = arith.constant 0 : i32
    %c0_i32_0 = arith.constant 0 : i32
    %c0_i32_1 = arith.constant 0 : i32
    return %c0_i32, %c0_i32_0 : i32, i32
  }
  func.func @transform_2(%arg0: i32, %arg1: i32) -> (i32, i32) {
    %c0_i32 = arith.constant 0 : i32
    %c0_i32_0 = arith.constant 0 : i32
    %c0_i32_1 = arith.constant 0 : i32
    return %c0_i32, %c0_i32_0 : i32, i32
  }
  func.func @transform_3(%arg0: i32, %arg1: i32) -> i32 {
    %c0_i32 = arith.constant 0 : i32
    %c0_i32_0 = arith.constant 0 : i32
    return %c0_i32 : i32
  }
  func.func @transform_4(%arg0: i32, %arg1: i32) -> (i32, i32, i32) {
    %c0_i32 = arith.constant 0 : i32
    %c0_i32_0 = arith.constant 0 : i32
    return %arg0, %c0_i32, %arg1 : i32, i32, i32
  }
}

</mosaic_0001>

<bundles_post_ra>
// kernel: residual_block.3
= control target key start
LH: loop header
LB: loop body
LE: loop exit
PB: predicated region body
PF: predicated region fallthrough
CT: control target
= control target key end

     0   :  { %s564_s17 = smov 0   ;;  %s566_s18 = smov 0   ;;  %s629_s0 = inlined_call_operand.vmem [shape: f32[2,76,256], index: 0, kind: input, shape index: {}]   ;;  %s630_s1 = inlined_call_operand.vmem [shape: f32[8,76], index: 1, kind: input, shape index: {}]   ;;  %s631_s2 = inlined_call_operand.vmem [shape: f32[8,1], index: 2, kind: input, shape index: {}]   ;;  %s632_s3 = inlined_call_operand.<no memory space> [shape: f32[1], index: 3, kind: input, shape index: {}]   ;;  %s633_s4 = inlined_call_operand.vmem [shape: f32[2,8,256], index: 4, kind: output, shape index: {}]  }
   0x1   :  { %9 = sst [smem:[#allocation2]] %s632_s3  ;;  %s568_s19 = smov 0  }
   0x2 LB: > { %s27_s3 = sadd.s32 1, %s527_s18  ;;  %p448_p0 = scmp.ge.s32.totalorder %s531_s19, 1  ;;  %s531_s19 = sphi %s568_s19, %s15_s19   ;;  %s527_s18 = sphi %s566_s18, %s635_s18   ;;  %s523_s17 = sphi %s564_s17, %s634_s17  }
   0x3   : > { %p29_p1 = scmp.ge.s32.totalorder %s27_s3, 2  ;;  %p184_p2 = scmp.lt.s32.totalorder %s531_s19, 3 }
   0x5   : > { %s637_s3 = smov (%p29_p1, %s27_s3), 0  ;;  %p185_p3 = pnand %p448_p0, %p184_p2 }
   0x6   : > { %p219_p4 = scmp.lt.s32.totalorder (!%p185_p3), %s523_s17, 1  ;;  %v533_v0 = vmov (!%p185_p3), 0.0   ;;  %v259_v1 = vld [vmem:[%s631_s2] sm:$0xff] (!%p185_p3)  ;;  %v534_v2 = vmov (!%p185_p3), 0   ;;  %vm269_vm0 = vcmask (!%p185_p3), 1043456   ;;  %vm535_vm1 = vmmov (!%p185_p3), 1  }
   0x7   : > { %188 = sbr.rel (%p185_p3) target bundleno = 260 (0x104), region = 36  ;;  %340 = vmatprep.mubr.f32.mxu0 (!%p185_p3), %v533_v0  ;;  %508 = vset.pattern.permute.xlu0 (!%p185_p3), %v534_v2  ;;  %vm475_vm2 = vmpackc.low (!%p185_p3), %vm269_vm0, %vm535_vm1  ;;  %v238_v33 = vld [vmem:[%s630_s1] sm:$0xff] (!%p185_p3)  ;;  %vm265_vm3 = vcmask (!%p185_p3), 621568   ;;  %s347_s28 = sld [smem:[#allocation2]] (!%p185_p3) }
   0x8   : > { %262 = vperm.xlu0 (!%p185_p3), %508, %v259_v1  }
   0xd   : > { %v350_v36 = vstv (!%p185_p3), %s347_s28 }
   0xe   : > { %s639_s17 = smov (!%p219_p4, %s523_s17), 1 }
   0xf   : > { %s480_s22 = smul.u32 160, %s639_s17  ;;  %s457_s29 = sshll.u32 %s639_s17, 4 }
  0x10   : > { %s236_s6 = scalar_lea.vmem %s633_s4, %s457_s29 }
  0x11   : > { %s591_s25 = scalar_lea.vmem %s629_s0, %s480_s22 }
  0x12   : > { %v240_v3 = vld [vmem:[%s591_s25 + $0x8] sm:$0xff]  ;;  %v242_v4 = vld [vmem:[%s591_s25 + $0x18] sm:$0xff]  ;;  %v239_v5 = vld [vmem:[%s591_s25] sm:$0xff] }
  0x13   : > { %v458_v6 = vpack.c.bf16 %v242_v4, %v240_v3  ;;  %v241_v7 = vld [vmem:[%s591_s25 + $0x10] sm:$0xff]  ;;  %v244_v8 = vld [vmem:[%s591_s25 + $0x28] sm:$0xff]  ;;  %v246_v9 = vld [vmem:[%s591_s25 + $0x38] sm:$0xff] }
  0x14   : > { %v460_v10 = vpack.c.bf16 %v241_v7, %v239_v5  ;;  %v462_v11 = vpack.c.bf16 %v246_v9, %v244_v8  ;;  %v243_v12 = vld [vmem:[%s591_s25 + $0x20] sm:$0xff]  ;;  %v245_v13 = vld [vmem:[%s591_s25 + $0x30] sm:$0xff]  ;;  %v248_v14 = vld [vmem:[%s591_s25 + $0x48] sm:$0xff] }
  0x15   : > { %459 = vmatprep.subr.bf16.mxu0 %v458_v6  ;;  %v250_v15 = vld [vmem:[%s591_s25 + $0x58] sm:$0xff]  ;;  %v464_v16 = vpack.c.bf16 %v245_v13, %v243_v12  ;;  %v247_v18 = vld [vmem:[%s591_s25 + $0x40] sm:$0xff]  ;;  %v249_v19 = vld [vmem:[%s591_s25 + $0x50] sm:$0xff] }
  0x16   : > { %461 = vmatpush1.bf16.msra.mxu0 %v460_v10  ;;  %v466_v17 = vpack.c.bf16 %v250_v15, %v248_v14  ;;  %v252_v20 = vld [vmem:[%s591_s25 + $0x68] sm:$0xff]  ;;  %v254_v21 = vld [vmem:[%s591_s25 + $0x78] sm:$0xff]  ;;  %v468_v22 = vpack.c.bf16 %v249_v19, %v247_v18  ;;  %v251_v24 = vld [vmem:[%s591_s25 + $0x60] sm:$0xff] }
  0x17   : > { %463 = vmatprep.subr.bf16.mxu0 %v462_v11  ;;  %v470_v23 = vpack.c.bf16 %v254_v21, %v252_v20  ;;  %v253_v25 = vld [vmem:[%s591_s25 + $0x70] sm:$0xff]  ;;  %v256_v26 = vld [vmem:[%s591_s25 + $0x88] sm:$0xff]  ;;  %v258_v27 = vld [vmem:[%s591_s25 + $0x98] sm:$0xf] }
  0x18   : > { %v472_v28 = vpack.c.bf16 %v253_v25, %v251_v24  ;;  %v474_v29 = vpack.c.bf16 %v258_v27, %v256_v26  ;;  %v255_v30 = vld [vmem:[%s591_s25 + $0x80] sm:$0xff]  ;;  %v257_v31 = vld [vmem:[%s591_s25 + $0x90] sm:$0xf] }
  0x19   : > { %v477_v32 = vpack.c.bf16 %v257_v31, %v255_v30 }
  0x1a   : > { %465 = vmatpush1.bf16.msra.mxu0 %v464_v16 }
  0x1b   : > { %467 = vmatprep.subr.bf16.mxu0 %v466_v17 }
  0x1e   : > { %469 = vmatpush1.bf16.msra.mxu0 %v468_v22 }
  0x1f   : > { %471 = vmatprep.subr.bf16.mxu0 %v470_v23 }
  0x22   : > { %473 = vmatpush1.bf16.msra.mxu0 %v472_v28 }
  0x23   : > { %476 = vmatprep.subr.msk.bf16.mxu0 %vm475_vm2, %v474_v29 }
  0x26   : > { %479 = vmatpush1.bf16.msk.msra.mxu0 %vm475_vm2, %v477_v32 }
  0x29   : > { %454 = vmatmul.mubr.msk.f32.vlgmr.msra.gmra.mrb[0].mxu0 %vm265_vm3, %v238_v33 }
  0x87   : > { %v263_v34 = vpop.permute.xlu0 %262 }
  0xfc   : > { %v342_v35 = vpop.f32.mrb[0].mxu0 }
  0xfd   : > { %v343_v37 = vadd.f32 %v342_v35, %v263_v34  ;;  %v344_v38 = vpop.f32.mrb[1].mxu0 }
  0xfe   : > { %v345_v39 = vadd.f32 %v344_v38, %v263_v34 }
  0xff   : > { %vm348_vm4 = vcmp.gt.f32.partialorder %v343_v37, 0.0  ;;  %v351_v40 = vmul.f32 %v350_v36, %v343_v37 }
 0x100   : > { %vm349_vm5 = vcmp.gt.f32.partialorder %v345_v39, 0.0  ;;  %v352_v41 = vmul.f32 %v350_v36, %v345_v39 }
 0x101   : > { %v353_v42 = vsel %vm348_vm4, %v343_v37, %v351_v40 }
 0x102   : > { %355 = vst [vmem:[%s236_s6] sm:$0xff] %v353_v42  ;;  %v354_v43 = vsel %vm349_vm5, %v345_v39, %v352_v41 }
 0x103   : > { %356 = vst [vmem:[%s236_s6 + $0x8] sm:$0xff] %v354_v43 }
 0x104 PF: > { %s15_s19 = sadd.s32 1, %s531_s19   ;;  %s634_s17 = smov %s527_s18 }
 0x105   : > { %p12_p5 = scmp.ge.s32.totalorder %s15_s19, 4   ;;  %s635_s18 = smov %s637_s3 }
 0x107   :  { %14 = sbr.rel (!%p12_p5) target bundleno = 2 (0x2), region = 66 }

// kernel: residual_block.2
= control target key start
LH: loop header
LB: loop body
LE: loop exit
PB: predicated region body
PF: predicated region fallthrough
CT: control target
= control target key end

     0   :  { %s538_s17 = smov 0   ;;  %s540_s18 = smov 0   ;;  %s581_s0 = inlined_call_operand.vmem [shape: f32[2,36,256], index: 0, kind: input, shape index: {}]   ;;  %s582_s1 = inlined_call_operand.vmem [shape: f32[8,36], index: 1, kind: input, shape index: {}]   ;;  %s583_s2 = inlined_call_operand.vmem [shape: f32[8,1], index: 2, kind: input, shape index: {}]   ;;  %s584_s3 = inlined_call_operand.<no memory space> [shape: f32[1], index: 3, kind: input, shape index: {}]   ;;  %s585_s4 = inlined_call_operand.vmem [shape: f32[2,8,256], index: 4, kind: output, shape index: {}]  }
   0x1   :  { %9 = sst [smem:[#allocation2]] %s584_s3  ;;  %s542_s19 = smov 0  }
   0x2 LB: > { %s27_s3 = sadd.s32 1, %s502_s18  ;;  %p438_p0 = scmp.ge.s32.totalorder %s506_s19, 1  ;;  %s506_s19 = sphi %s542_s19, %s15_s19   ;;  %s502_s18 = sphi %s540_s18, %s587_s18   ;;  %s498_s17 = sphi %s538_s17, %s586_s17  }
   0x3   : > { %p29_p1 = scmp.ge.s32.totalorder %s27_s3, 2  ;;  %p184_p2 = scmp.lt.s32.totalorder %s506_s19, 3 }
   0x5   : > { %s589_s3 = smov (%p29_p1, %s27_s3), 0  ;;  %p185_p3 = pnand %p438_p0, %p184_p2 }
   0x6   : > { %p219_p4 = scmp.lt.s32.totalorder (!%p185_p3), %s498_s17, 1  ;;  %v508_v0 = vmov (!%p185_p3), 0.0   ;;  %v509_v1 = vmov (!%p185_p3), 0   ;;  %v249_v2 = vld [vmem:[%s583_s2] sm:$0xff] (!%p185_p3)  ;;  %vm259_vm0 = vcmask (!%p185_p3), 1043456   ;;  %vm255_vm1 = vcmask (!%p185_p3), 293888  }
   0x7   : > { %188 = sbr.rel (%p185_p3) target bundleno = 250 (0xfa), region = 36  ;;  %330 = vmatprep.mubr.f32.mxu0 (!%p185_p3), %v508_v0  ;;  %483 = vset.pattern.permute.xlu0 (!%p185_p3), %v509_v1  ;;  %v238_v17 = vld [vmem:[%s582_s1] sm:$0xff] (!%p185_p3)  ;;  %s337_s28 = sld [smem:[#allocation2]] (!%p185_p3) }
   0x8   : > { %252 = vperm.xlu0 (!%p185_p3), %483, %v249_v2  }
   0xd   : > { %v340_v20 = vstv (!%p185_p3), %s337_s28 }
   0xe   : > { %s591_s17 = smov (!%p219_p4, %s498_s17), 1 }
   0xf   : > { %s456_s22 = smul.u32 80, %s591_s17  ;;  %s447_s29 = sshll.u32 %s591_s17, 4 }
  0x10   : > { %s236_s6 = scalar_lea.vmem %s585_s4, %s447_s29 }
  0x11   : > { %s226_s25 = scalar_lea.vmem %s581_s0, %s456_s22 }
  0x12   : > { %v240_v3 = vld [vmem:[%s226_s25 + $0x8] sm:$0xff]  ;;  %v242_v4 = vld [vmem:[%s226_s25 + $0x18] sm:$0xff]  ;;  %v239_v5 = vld [vmem:[%s226_s25] sm:$0xff] }
  0x13   : > { %v448_v6 = vpack.c.bf16 %v242_v4, %v240_v3  ;;  %v241_v7 = vld [vmem:[%s226_s25 + $0x10] sm:$0xff]  ;;  %v244_v8 = vld [vmem:[%s226_s25 + $0x28] sm:$0xff]  ;;  %v246_v9 = vld [vmem:[%s226_s25 + $0x38] sm:$0xff] }
  0x14   : > { %v450_v10 = vpack.c.bf16 %v241_v7, %v239_v5  ;;  %v452_v11 = vpack.c.bf16 %v246_v9, %v244_v8  ;;  %v243_v12 = vld [vmem:[%s226_s25 + $0x20] sm:$0xff]  ;;  %v245_v13 = vld [vmem:[%s226_s25 + $0x30] sm:$0xff]  ;;  %v248_v15 = vld [vmem:[%s226_s25 + $0x48] sm:$0xf] }
  0x15   : > { %449 = vmatprep.subr.bf16.mxu0 %v448_v6  ;;  %v454_v14 = vpack.c.bf16 %v245_v13, %v243_v12  ;;  %v247_v16 = vld [vmem:[%s226_s25 + $0x40] sm:$0xf] }
  0x16   : > { %451 = vmatpush1.bf16.msra.mxu0 %v450_v10 }
  0x17   : > { %453 = vmatprep.subr.bf16.mxu0 %v452_v11 }
  0x1a   : > { %455 = vmatpush1.bf16.msra.mxu0 %v454_v14 }
  0x1b   : > { %442 = vmatprep.subr.msk.mxu0 %vm259_vm0, %v248_v15 }
  0x1e   : > { %443 = vmatpush1.msk.msra.mxu0 %vm259_vm0, %v247_v16 }
  0x1f   : > { %444 = vmatmul.mubr.msk.f32.vlgmr.msra.gmra.mrb[0].mxu0 %vm255_vm1, %v238_v17 }
  0x87   : > { %v253_v18 = vpop.permute.xlu0 %252 }
  0xf2   : > { %v332_v19 = vpop.f32.mrb[0].mxu0 }
  0xf3   : > { %v333_v21 = vadd.f32 %v332_v19, %v253_v18  ;;  %v334_v22 = vpop.f32.mrb[1].mxu0 }
  0xf4   : > { %v335_v23 = vadd.f32 %v334_v22, %v253_v18 }
  0xf5   : > { %vm338_vm2 = vcmp.gt.f32.partialorder %v333_v21, 0.0  ;;  %v341_v24 = vmul.f32 %v340_v20, %v333_v21 }
  0xf6   : > { %vm339_vm3 = vcmp.gt.f32.partialorder %v335_v23, 0.0  ;;  %v342_v25 = vmul.f32 %v340_v20, %v335_v23 }
  0xf7   : > { %v343_v26 = vsel %vm338_vm2, %v333_v21, %v341_v24 }
  0xf8   : > { %345 = vst [vmem:[%s236_s6] sm:$0xff] %v343_v26  ;;  %v344_v27 = vsel %vm339_vm3, %v335_v23, %v342_v25 }
  0xf9   : > { %346 = vst [vmem:[%s236_s6 + $0x8] sm:$0xff] %v344_v27 }
  0xfa PF: > { %s15_s19 = sadd.s32 1, %s506_s19   ;;  %s586_s17 = smov %s502_s18 }
  0xfb   : > { %p12_p5 = scmp.ge.s32.totalorder %s15_s19, 4   ;;  %s587_s18 = smov %s589_s3 }
  0xfd   :  { %14 = sbr.rel (!%p12_p5) target bundleno = 2 (0x2), region = 66 }

</bundles_post_ra>
